<compile_context>
chip_gen: v7x
topology: tpu7x:2x2x1
jax: 0.10.0
libtpu: 0.0.40
codegen_flags: <defaults>
</compile_context>

<pallas_src>
import functools

import jax
import jax.numpy as jnp
from jax.experimental import pallas as pl
from jax.experimental.pallas import tpu as pltpu


def _prenorm_kernel(x_ref, w_ref, wb_ref, o_ref, *, eps, use_mxu):
    # x_ref: (C, T) — channels on sublanes, spatial pixels on lanes.
    x = x_ref[...].astype(jnp.float32)
    c = x.shape[0]

    # --- LayerNorm stats over the channel (sublane) axis, single pass ---
    s = jnp.sum(x, axis=0, keepdims=True)            # (1, T)
    ss = jnp.sum(x * x, axis=0, keepdims=True)       # (1, T)
    inv_c = 1.0 / c
    mean = s * inv_c
    var = jnp.maximum(ss * inv_c - mean * mean, 0.0)  # unbiased=False
    std = jnp.sqrt(var)
    # eps is added to std (sqrt(var) + eps) to match the PyTorch module
    # (this intentionally differs from standard nn.LayerNorm).
    inv = pl.reciprocal(std + eps, approx=True)       # EUP slot (~free)

    # g / b are folded into the conv weight / bias in the wrapper.
    normed = (x - mean) * inv                         # (C, T)

    wb = wb_ref[...].astype(jnp.float32)              # (C_out, 1)
    if use_mxu:
        # 1x1 conv == channel matmul: W' (C_out, C_in) @ normed (C_in, T).
        # bf16 operands (full-rate MXU path), f32 accumulate.
        y = jnp.dot(w_ref[...], normed.astype(jnp.bfloat16),
                    preferred_element_type=jnp.float32)
    else:
        # Tiny C: a padded matmul would be almost all MXU padding — do the
        # projection as C rank-1 multiply-adds on the VPU instead.
        w = w_ref[...].astype(jnp.float32)            # (C_out, C_in)
        y = w[:, 0:1] * normed[0:1, :]
        for ci in range(1, w.shape[1]):
            y = y + w[:, ci:ci + 1] * normed[ci:ci + 1, :]

    o_ref[...] = (y + wb).astype(o_ref.dtype)


def prenorm_conv1x1(x_nchw, g, b, conv_w, conv_b, *, eps=1e-5, max_tile=2048):
    """PreNorm(dim, Conv2d(dim, dim, 1)) forward.

    x_nchw : (B, C, H, W)
    g, b   : (C,)   LayerNorm scale / shift
    conv_w : (C, C) 1x1 conv weight, [out_ch, in_ch]
    conv_b : (C,)   conv bias
    """
    B, C, H, W = x_nchw.shape
    HW = H * W

    # NCHW-native: free reshape, no transposes. Channels -> sublanes,
    # spatial pixels -> lanes (lane-dense output stores).
    x3d = x_nchw.reshape(B, C, HW)

    use_mxu = C >= 32
    w_dtype = jnp.bfloat16 if use_mxu else jnp.float32
    x_itemsize = jnp.dtype(x_nchw.dtype).itemsize
    w_itemsize = jnp.dtype(w_dtype).itemsize

    # Fold the LN affine into the 1x1 conv (f32 fold, cast once):
    #   W @ ((x-mean)*inv*g + b) + cb == (W*g) @ ((x-mean)*inv) + (W@b + cb)
    g32 = g.reshape(C).astype(jnp.float32)
    b32 = b.reshape(C).astype(jnp.float32)
    w32 = conv_w.astype(jnp.float32)
    w_folded = (w32 * g32[None, :]).astype(w_dtype)               # (C_out, C_in)
    wb_folded = (w32 @ b32 + conv_b.astype(jnp.float32)).reshape(C, 1)

    # Generation-aware VMEM budget (v5e/v6e: 128 MiB, v7x: 64 MiB per core).
    try:
        vmem_cap = int(pltpu.get_tpu_info().vmem_capacity_bytes)
    except Exception:  # fall back to the most constrained generation (v7x)
        vmem_cap = 64 << 20

    resident = 2 * (C * C * w_itemsize + C * 4)                   # weights + bias

    def _block_bytes(t):
        # double-buffered x + out tiles + (double-buffered) resident params
        return 4 * C * t * x_itemsize + resident

    tile_budget = max(16 << 20, vmem_cap // 2)

    def _fits(t):
        return _block_bytes(t) <= tile_budget

    # Lane tile: as large as fits. Prefer the full spatial axis, then a /128
    # divisor of HW (no partial tile); otherwise a /128 tile with a partial
    # last block (out-of-bounds lanes are dropped on writeback — no pad/slice).
    if HW <= max_tile and _fits(HW):
        t_hw = HW
    else:
        hi = min(max_tile, (HW // 128) * 128)
        t_hw = 0
        for t in range(hi, 127, -128):
            if HW % t == 0 and _fits(t):
                t_hw = t
                break
        if t_hw == 0:
            t_hw = max(128, hi)
            while t_hw > 128 and not _fits(t_hw):
                t_hw -= 128

    # v7x has 2 TensorCores sharded over "parallel" grid axes: make sure the
    # grid has >= 2 steps when the spatial axis is big enough to split.
    if B * pl.cdiv(HW, t_hw) < 2 and HW >= 256:
        t_hw = pl.cdiv(pl.cdiv(HW, 2), 128) * 128

    grid = (B, pl.cdiv(HW, t_hw))

    vmem_limit = int(min(max(2 * _block_bytes(t_hw) + (16 << 20), 32 << 20),
                         (vmem_cap * 3) // 4))

    kernel = functools.partial(_prenorm_kernel, eps=eps, use_mxu=use_mxu)

    out3d = pl.pallas_call(
        kernel,
        out_shape=jax.ShapeDtypeStruct((B, C, HW), x_nchw.dtype),
        grid=grid,
        in_specs=[
            pl.BlockSpec((None, C, t_hw), lambda bi, j: (bi, 0, j)),  # x tile
            pl.BlockSpec((C, C), lambda bi, j: (0, 0)),               # folded W
            pl.BlockSpec((C, 1), lambda bi, j: (0, 0)),               # folded bias
        ],
        out_specs=pl.BlockSpec((None, C, t_hw), lambda bi, j: (bi, 0, j)),
        compiler_params=pltpu.CompilerParams(
            dimension_semantics=("parallel", "parallel"),
            vmem_limit_bytes=vmem_limit),
    )(x3d, w_folded, wb_folded)

    return out3d.reshape(B, C, H, W)


def _reference(x_nchw, g, b, conv_w, conv_b, eps=1e-5):
    """Pure-JAX reference mirroring the PyTorch module."""
    x = x_nchw.astype(jnp.float32)
    mean = jnp.mean(x, axis=1, keepdims=True)
    std = jnp.sqrt(jnp.var(x, axis=1, keepdims=True))     # unbiased=False
    normed = (x - mean) / (std + eps) * g.reshape(1, -1, 1, 1) + b.reshape(1, -1, 1, 1)
    y = jnp.einsum("bchw,oc->bohw", normed, conv_w) + conv_b.reshape(1, -1, 1, 1)
    return y


def _run_case(key, B, C, H, W):
    kx, kg, kb2, kw, kb = jax.random.split(key, 5)
    x = jax.random.normal(kx, (B, C, H, W), dtype=jnp.float32)
    # LayerNorm params (init is ones/zeros; perturb so the test exercises them).
    g = 1.0 + 0.1 * jax.random.normal(kg, (C,), dtype=jnp.float32)
    b = 0.1 * jax.random.normal(kb2, (C,), dtype=jnp.float32)
    # The wrapped `fn`: a 1x1 conv (deterministic synthetic weights).
    conv_w = 0.1 * jax.random.normal(kw, (C, C), dtype=jnp.float32)
    conv_b = 0.05 * jax.random.normal(kb, (C,), dtype=jnp.float32)

    out = jax.block_until_ready(prenorm_conv1x1(x, g, b, conv_w, conv_b))
    ref = _reference(x, g, b, conv_w, conv_b)
    assert out.shape == (B, C, H, W)
    # Tolerance accounts for bf16 MXU operands + approx EUP reciprocal.
    assert jnp.allclose(out, ref, atol=2e-2, rtol=2e-2), \
        f"mismatch vs reference for shape {(B, C, H, W)}"


if __name__ == "__main__":
    key = jax.random.PRNGKey(0)
    k1, k2, k3 = jax.random.split(key, 3)
    # Spec-sized toy case (small-C VPU projection path).
    _run_case(k1, 2, 4, 16, 16)
    # Realistic channel count (bf16 MXU matmul path).
    _run_case(k2, 2, 128, 16, 16)
    # Non-divisible spatial axis (partial last lane tile, no pad/slice).
    _run_case(k3, 1, 32, 48, 50)
    print("KERNEL_OK")
</pallas_src>

<mosaic_0001>
module attributes {stable_mosaic.version = 11 : i64} {
  func.func @_prenorm_kernel(%arg0: i32, %arg1: i32, %arg2: memref<1x4x256xf32, #tpu.memory_space<vmem>>, %arg3: memref<4x4xf32, #tpu.memory_space<vmem>>, %arg4: memref<4x1xf32, #tpu.memory_space<vmem>>, %arg5: memref<1x4x256xf32, #tpu.memory_space<vmem>>) attributes {dimension_semantics = [#tpu.dimension_semantics<parallel>, #tpu.dimension_semantics<parallel>], iteration_bounds = array<i64: 2, 1>, scalar_prefetch = 0 : i64, scratch_operands = 0 : i64, tpu.core_type = #tpu.core_type<tc>, window_params = [{transform_indices = @transform_0, window_bounds = array<i64: 1, 4, 256>}, {pipeline_mode = #tpu.pipeline_mode<synchronous>, transform_indices = @transform_1, window_bounds = array<i64: 4, 4>}, {pipeline_mode = #tpu.pipeline_mode<synchronous>, transform_indices = @transform_2, window_bounds = array<i64: 4, 1>}, {transform_indices = @transform_3, window_bounds = array<i64: 1, 4, 256>}]} {
    %c0 = arith.constant 0 : index
    %c0_0 = arith.constant 0 : index
    %c0_1 = arith.constant 0 : index
    %0 = vector.load %arg2[%c0, %c0_0, %c0_1] : memref<1x4x256xf32, #tpu.memory_space<vmem>>, vector<1x4x256xf32>
    %1 = vector.shape_cast %0 : vector<1x4x256xf32> to vector<4x256xf32>
    %cst = arith.constant dense<0.000000e+00> : vector<256xf32>
    %2 = vector.multi_reduction <add>, %1, %cst [0] : vector<4x256xf32> to vector<256xf32>
    %3 = vector.shape_cast %2 : vector<256xf32> to vector<1x256xf32>
    %4 = arith.mulf %1, %1 : vector<4x256xf32>
    %cst_2 = arith.constant dense<0.000000e+00> : vector<256xf32>
    %5 = vector.multi_reduction <add>, %4, %cst_2 [0] : vector<4x256xf32> to vector<256xf32>
    %6 = vector.shape_cast %5 : vector<256xf32> to vector<1x256xf32>
    %cst_3 = arith.constant 2.500000e-01 : f32
    %7 = vector.broadcast %cst_3 : f32 to vector<1x256xf32>
    %8 = arith.mulf %3, %7 : vector<1x256xf32>
    %cst_4 = arith.constant 2.500000e-01 : f32
    %9 = vector.broadcast %cst_4 : f32 to vector<1x256xf32>
    %10 = arith.mulf %6, %9 : vector<1x256xf32>
    %11 = arith.mulf %8, %8 : vector<1x256xf32>
    %12 = arith.subf %10, %11 : vector<1x256xf32>
    %cst_5 = arith.constant 0.000000e+00 : f32
    %13 = vector.broadcast %cst_5 : f32 to vector<1x256xf32>
    %14 = arith.maximumf %12, %13 : vector<1x256xf32>
    %15 = math.sqrt %14 : vector<1x256xf32>
    %cst_6 = arith.constant 9.99999974E-6 : f32
    %16 = vector.broadcast %cst_6 : f32 to vector<1x256xf32>
    %17 = arith.addf %15, %16 : vector<1x256xf32>
    %18 = tpu.reciprocal %17 {approx = true} : vector<1x256xf32> -> vector<1x256xf32>
    %19 = vector.broadcast %8 : vector<1x256xf32> to vector<4x256xf32>
    %20 = arith.subf %1, %19 : vector<4x256xf32>
    %21 = vector.broadcast %18 : vector<1x256xf32> to vector<4x256xf32>
    %22 = arith.mulf %20, %21 : vector<4x256xf32>
    %c0_7 = arith.constant 0 : index
    %c0_8 = arith.constant 0 : index
    %23 = vector.load %arg4[%c0_7, %c0_8] : memref<4x1xf32, #tpu.memory_space<vmem>>, vector<4x1xf32>
    %c0_9 = arith.constant 0 : index
    %c0_10 = arith.constant 0 : index
    %24 = vector.load %arg3[%c0_9, %c0_10] : memref<4x4xf32, #tpu.memory_space<vmem>>, vector<4x4xf32>
    %25 = vector.extract_strided_slice %24 {offsets = [0, 0], sizes = [4, 1], strides = [1, 1]} : vector<4x4xf32> to vector<4x1xf32>
    %26 = vector.extract_strided_slice %22 {offsets = [0, 0], sizes = [1, 256], strides = [1, 1]} : vector<4x256xf32> to vector<1x256xf32>
    %27 = vector.broadcast %25 : vector<4x1xf32> to vector<4x256xf32>
    %28 = vector.broadcast %26 : vector<1x256xf32> to vector<4x256xf32>
    %29 = arith.mulf %27, %28 : vector<4x256xf32>
    %30 = vector.extract_strided_slice %24 {offsets = [0, 1], sizes = [4, 1], strides = [1, 1]} : vector<4x4xf32> to vector<4x1xf32>
    %31 = vector.extract_strided_slice %22 {offsets = [1, 0], sizes = [1, 256], strides = [1, 1]} : vector<4x256xf32> to vector<1x256xf32>
    %32 = vector.broadcast %30 : vector<4x1xf32> to vector<4x256xf32>
    %33 = vector.broadcast %31 : vector<1x256xf32> to vector<4x256xf32>
    %34 = arith.mulf %32, %33 : vector<4x256xf32>
    %35 = arith.addf %29, %34 : vector<4x256xf32>
    %36 = vector.extract_strided_slice %24 {offsets = [0, 2], sizes = [4, 1], strides = [1, 1]} : vector<4x4xf32> to vector<4x1xf32>
    %37 = vector.extract_strided_slice %22 {offsets = [2, 0], sizes = [1, 256], strides = [1, 1]} : vector<4x256xf32> to vector<1x256xf32>
    %38 = vector.broadcast %36 : vector<4x1xf32> to vector<4x256xf32>
    %39 = vector.broadcast %37 : vector<1x256xf32> to vector<4x256xf32>
    %40 = arith.mulf %38, %39 : vector<4x256xf32>
    %41 = arith.addf %35, %40 : vector<4x256xf32>
    %42 = vector.extract_strided_slice %24 {offsets = [0, 3], sizes = [4, 1], strides = [1, 1]} : vector<4x4xf32> to vector<4x1xf32>
    %43 = vector.extract_strided_slice %22 {offsets = [3, 0], sizes = [1, 256], strides = [1, 1]} : vector<4x256xf32> to vector<1x256xf32>
    %44 = vector.broadcast %42 : vector<4x1xf32> to vector<4x256xf32>
    %45 = vector.broadcast %43 : vector<1x256xf32> to vector<4x256xf32>
    %46 = arith.mulf %44, %45 : vector<4x256xf32>
    %47 = arith.addf %41, %46 : vector<4x256xf32>
    %48 = vector.broadcast %23 : vector<4x1xf32> to vector<4x256xf32>
    %49 = arith.addf %47, %48 : vector<4x256xf32>
    %c0_11 = arith.constant 0 : index
    %c0_12 = arith.constant 0 : index
    %c0_13 = arith.constant 0 : index
    %50 = vector.load %arg5[%c0_11, %c0_12, %c0_13] : memref<1x4x256xf32, #tpu.memory_space<vmem>>, vector<1x4x256xf32>
    %51 = vector.shape_cast %50 : vector<1x4x256xf32> to vector<4x256xf32>
    %52 = vector.shape_cast %49 : vector<4x256xf32> to vector<1x4x256xf32>
    tpu.vector_store %arg5[%c0_11, %c0_12, %c0_13], %52 {strides = array<i32>} : memref<1x4x256xf32, #tpu.memory_space<vmem>>, vector<1x4x256xf32>,
    return
  }
  func.func @transform_0(%arg0: i32, %arg1: i32) -> (i32, i32, i32) {
    %c0_i32 = arith.constant 0 : i32
    %c0_i32_0 = arith.constant 0 : i32
    return %arg0, %c0_i32, %arg1 : i32, i32, i32
  }
  func.func @transform_1(%arg0: i32, %arg1: i32) -> (i32, i32) {
    %c0_i32 = arith.constant 0 : i32
    %c0_i32_0 = arith.constant 0 : i32
    %c0_i32_1 = arith.constant 0 : i32
    return %c0_i32, %c0_i32_0 : i32, i32
  }
  func.func @transform_2(%arg0: i32, %arg1: i32) -> (i32, i32) {
    %c0_i32 = arith.constant 0 : i32
    %c0_i32_0 = arith.constant 0 : i32
    %c0_i32_1 = arith.constant 0 : i32
    return %c0_i32, %c0_i32_0 : i32, i32
  }
  func.func @transform_3(%arg0: i32, %arg1: i32) -> (i32, i32, i32) {
    %c0_i32 = arith.constant 0 : i32
    %c0_i32_0 = arith.constant 0 : i32
    return %arg0, %c0_i32, %arg1 : i32, i32, i32
  }
}

</mosaic_0001>

<bundles_post_ra>
// kernel: tpu_custom_call.1
= control target key start
LH: loop header
LB: loop body
LE: loop exit
PB: predicated region body
PF: predicated region fallthrough
CT: control target
= control target key end

     0   :  { %8 = vsyncpa [#allocation3], 0  ;;  %s929_s0 = inlined_call_operand.hbm [shape: f32[2,4,256], index: 0, kind: input, shape index: {}]   ;;  %s930_s1 = inlined_call_operand.vmem [shape: f32[4,4], index: 1, kind: input, shape index: {}]   ;;  %s931_s2 = inlined_call_operand.vmem [shape: f32[4,1], index: 2, kind: input, shape index: {}]   ;;  %s932_s3 = inlined_call_operand.hbm [shape: f32[2,4,256], index: 3, kind: output, shape index: {}]  }
   0x1   :  { %10 = vsyncpa [#allocation3 + $0x1], 0 }
   0x2   :  { %11 = vsyncpa [#allocation4], 0 }
   0x3   :  { %13 = vsyncpa [#allocation4 + $0x1], 0  ;;  %s739_s12 = smov 0   ;;  %s741_s13 = smov 0  }
   0x4   :  { %s743_s14 = smov 0   ;;  %s745_s15 = smov 0  }
   0x5   :  { %s747_s16 = smov 0   ;;  %s749_s17 = smov 0  }
   0x6 LB: > { %s501_s18 = sadd.s32 4294967295, %s711_s17   ;;  %s502_s19 = sadd.s32 4294967294, %s711_s17   ;;  %s711_s17 = sphi %s749_s17, %s19_s17   ;;  %s707_s16 = sphi %s747_s16, %s948_s16   ;;  %s703_s15 = sphi %s745_s15, %s947_s15   ;;  %s699_s14 = sphi %s743_s14, %s946_s14   ;;  %s695_s13 = sphi %s741_s13, %s945_s13   ;;  %s691_s12 = sphi %s739_s12, %s944_s12  }
   0x7   : > { %s31_s20 = sadd.s32 1, %s707_s16  ;;  %s40_s21 = sadd.s32 1, %s699_s14 }
   0x8   : > { %p33_p0 = scmp.ge.s32.totalorder %s31_s20, 2  ;;  %p47_p1 = scmp.ne.s32.totalorder %s699_s14, %s695_s13 }
   0x9   : > { %p48_p2 = scmp.eq.s32.totalorder %s711_s17, 0  ;;  %p53_p3 = scmp.ne.s32.totalorder %s695_s13, %s691_s12 }
   0xa   : > { %s950_s20 = smov (%p33_p0, %s31_s20), 0  ;;  %p54_p5 = scmp.eq.s32.totalorder %s501_s18, 0 }
   0xb   : > { %p780_p4 = por %p48_p2, %p47_p1  ;;  %s35_s23 = ssub.s32 %s707_s16, %s950_s20 }
   0xc   : > { %p121_p6 = scmp.eq.s32.totalorder %s501_s18, 1  ;;  %p38_p7 = scmp.eq.s32.totalorder %s35_s23, 0 }
   0xd   : > { %p786_p8 = por %p54_p5, %p53_p3  ;;  %p127_p10 = scmp.eq.s32.totalorder %s502_s19, 1 }
   0xe   : > { %p790_p9 = por %p121_p6, %p47_p1  ;;  %p530_p13 = scmp.lt.s32.totalorder %s711_s17, 2 }
   0xf   : > { %s795_s26 = scalar_select %p38_p7, %s699_s14, %s40_s21  }
  0x10   : > { %s936_s25 = scalar_select %p790_p9, 1, 0 }
  0x11   : > { %p797_p11 = por %p127_p10, %p53_p3  ;;  %s153_s28 = sand.u32 1, %s699_s14  }
  0x12   : > { %s505_s29 = sshll.u32 %s153_s28, 3  ;;  %s516_s30 = sshll.u32 %s707_s16, 7 }
  0x13   : > { %s937_s27 = scalar_select %p797_p11, 1, 0 }
  0x14   : > { %s808_s6 = scalar_lea.hbm %s929_s0, %s516_s30  ;;  %s157_s7 = scalar_lea.vmem [#allocation2], %s505_s29 }
  0x15   : > { %s167_s8 = sshll.u32 %s157_s7, 4  ;;  %p814_p0 = pnand %p530_p13, %p780_p4  ;;  %s810_s8 = int_to_ptr.vmem [resolvable:$true] %s167_s8 }
  0x16   : > { %s154_s10 = scalar_lea.sflag [#allocation3], %s153_s28  ;;  %s599_s11 = scalar_lea.hbm %s808_s6, 128 }
  0x17   : > { %p600_p3 = scmp.ne.s32.totalorder %s808_s6, %s599_s11  ;;  %p601_p5 = pneg %p814_p0 }
  0x18   : > { %s604_s21 = scalar_lea.hbm %s929_s0, 256  ;;  %p605_p4 = scmp.lt.u32.totalorder %s808_s6, %s929_s0 }
  0x19   : > { %p602_p6 = pnand %p601_p5, %p600_p3  ;;  %p606_p10 = scmp.lt.u32.totalorder %s604_s21, %s599_s11 }
  0x1a   : > { %p608_p12 = scmp.lt.u32.totalorder %s599_s11, %s808_s6 }
  0x1b   : > { %p603_p7 = pneg %p602_p6  ;;  %p607_p13 = por %p606_p10, %p605_p4 }
  0x1d   : > { %p609_p1 = por %p608_p12, %p607_p13 }
  0x1f   : > { %p610_p2 = pnand %p609_p1, %p603_p7 }
  0x21   : > { %613 = shalt.err (!%p610_p2)
}
  0x22   : > { %s614_s28 = scalar_lea.vmem %s810_s8, 128  ;;  %s713_s29 = smov [#allocation2]  }
  0x23   : > { %p615_p3 = scmp.ne.s32.totalorder %s810_s8, %s614_s28  ;;  %s619_s30 = sshll.u32 %s713_s29, 4  ;;  %s620_s30 = int_to_ptr.vmem [resolvable:$false] %s619_s30 }
  0x24   : > { %s621_s4 = scalar_lea.vmem %s620_s30, 256  ;;  %p622_p9 = scmp.lt.s32.totalorder %s810_s8, %s620_s30 }
  0x25   : > { %p617_p6 = pnand %p615_p3, %p601_p5  ;;  %p623_p4 = scmp.lt.s32.totalorder %s621_s4, %s614_s28 }
  0x27   : > { %p618_p11 = pneg %p617_p6  ;;  %p624_p10 = por %p623_p4, %p622_p9 }
  0x29   : > { %p625_p12 = pnand %p624_p10, %p618_p11 }
  0x2b   : > { %628 = shalt.err (!%p625_p12)
}
  0x2c   : > { %525 = dma.hbm_to_vmem [thread:$0]  (!%p814_p0), %s808_s6, 128, %s810_s8, %s154_s10  }
  0x2d   : > { %p939_p1 = scmp.lt.s32.totalorder %s711_s17, 3  ;;  %p940_p2 = scmp.ge.s32.totalorder %s711_s17, 1 }
  0x2f   : > { %p173_p5 = pnand %p940_p2, %p939_p1 }
  0x30   : > { %s850_s5 = sand.u32 (!%p173_p5), 1, %s695_s13  }
  0x31   : > { %176 = sbr.rel (%p173_p5) target bundleno = 218 (0xda), region = 32  ;;  %s509_s7 = sshll.u32 (!%p173_p5), %s850_s5, 3 }
  0x32   : > { %s179_s11 = scalar_lea.sflag (!%p173_p5), [#allocation3], %s850_s5  ;;  %s182_s9 = scalar_lea.vmem (!%p173_p5), [#allocation2], %s509_s7 }
  0x38   : > { %682 = dma.done.wait (%p786_p8), %s179_s11, 128  }
  0x39   : > { %684 = vsyncadd (%p786_p8), %s179_s11, 4294967168  ;;  %v714_v0 = vmov 0   ;;  %v715_v1 = vmov 2   ;;  %v283_v2 = vld [vmem:[%s930_s1] sm:$0xf]  ;;  %v716_v3 = vmov 1   ;;  %v290_v60 = vlaneseq }
  0x3a   : > { %584 = vset.pattern.permute.xlu0 %v714_v0  ;;  %586 = vset.pattern.permute.xlu1 %v715_v1  ;;  %v717_v4 = vmov 3   ;;  %v282_v5 = vld [vmem:[%s931_s2] sm:$0xf]  ;;  %vm211_vm0 = vcmask 1043456   ;;  %s517_s24 = sshll.u32 %s703_s15, 7  ;;  %s204_s19 = scalar_lea.vmem [#allocation5], %s509_s7 }
  0x3b   : > { %286 = vperm.xlu0 %584, %v283_v2   ;;  %337 = vperm.xlu1 %586, %v283_v2   ;;  %v866_v6 = vld [vmem:[%s182_s9] sm:$0xff]  ;;  %s417_s21 = sshll.u32 %s204_s19, 4  ;;  %s880_s28 = scalar_lea.hbm %s932_s3, %s517_s24  ;;  %s882_s21 = int_to_ptr.vmem [resolvable:$true] %s417_s21 }
  0x3c   : > { %v209_v7 = vcombine.high %v866_v6, %v866_v6  ;;  %v226_v8 = vmul.f32 %v866_v6, %v866_v6  ;;  %v212_v9 = vsel %vm211_vm0, %v866_v6, 0.0  ;;  %s401_s29 = scalar_lea.sflag [#allocation4], %s850_s5  ;;  %s629_s30 = scalar_lea.vmem %s882_s21, 128 }
  0x3d   : > { %v213_v12 = vrot.slane %v212_v9, 4  ;;  %p630_p8 = scmp.ne.s32.totalorder %s882_s21, %s629_s30  ;;  %p941_p9 = scmp.ne.s32.totalorder %s936_s25, 0 }
  0x3e   : > { %v228_v10 = vcombine.high %v226_v8, %v226_v8  ;;  %v219_v11 = vsel %vm211_vm0, %v209_v7, 0.0  ;;  %v230_v13 = vsel %vm211_vm0, %v226_v8, 0.0  ;;  %s718_s15 = smov [#allocation5]  }
  0x3f   : > { %585 = vset.pattern.permute.xlu0 %v716_v3  ;;  %587 = vset.pattern.permute.xlu1 %v717_v4  ;;  %v220_v14 = vrot.slane %v219_v11, 4  ;;  %v231_v16 = vrot.slane %v230_v13, 4  ;;  %v214_v17 = vadd.f32 %v213_v12, %v212_v9  ;;  %p631_p11 = pnand %p630_p8, %p941_p9  ;;  %s633_s4 = sshll.u32 %s718_s15, 4  ;;  %s634_s4 = int_to_ptr.vmem [resolvable:$false] %s633_s4 }
  0x40   : > { %311 = vperm.xlu0 %585, %v283_v2   ;;  %363 = vperm.xlu1 %587, %v283_v2   ;;  %v237_v15 = vsel %vm211_vm0, %v228_v10, 0.0  ;;  %s635_s7 = scalar_lea.vmem %s634_s4, 256  ;;  %p636_p7 = scmp.lt.s32.totalorder %s882_s21, %s634_s4 }
  0x41   : > { %v238_v18 = vrot.slane %v237_v15, 4  ;;  %v221_v19 = vadd.f32 %v220_v14, %v219_v11  ;;  %v232_v20 = vadd.f32 %v231_v16, %v230_v13  ;;  %v215_v21 = vrot.slane %v214_v17, 2  ;;  %p632_p0 = pneg %p631_p11  ;;  %p637_p13 = scmp.lt.s32.totalorder %s635_s7, %s629_s30 }
  0x43   : > { %v239_v22 = vadd.f32 %v238_v18, %v237_v15  ;;  %v222_v23 = vrot.slane %v221_v19, 2  ;;  %v233_v24 = vrot.slane %v232_v20, 2  ;;  %v216_v25 = vadd.f32 %v215_v21, %v214_v17  ;;  %p638_p3 = por %p637_p13, %p636_p7 }
  0x44   : > { %588 = vset.pattern.permute.xlu1 %v714_v0  ;;  %589 = vset.pattern.permute.xlu0 %v714_v0  ;;  %v291_v0 = vshrl.u32 %v290_v60, 7 }
  0x45   : > { %390 = vperm.xlu1 %588, %v282_v5   ;;  %v223_v26 = vadd.f32 %v222_v23, %v221_v19  ;;  %v240_v27 = vrot.slane %v239_v22, 2  ;;  %v217_v28 = vrot.slane %v216_v25, 1  ;;  %v234_v29 = vadd.f32 %v233_v24, %v232_v20  ;;  %p639_p6 = pnand %p638_p3, %p632_p0 }
  0x46   : > { %v292_v3 = vsub.s32 0, %v291_v0  ;;  %v296_v4 = vsub.s32 4, %v291_v0  ;;  %v316_v7 = vsub.s32 1, %v291_v0  ;;  %v320_v8 = vsub.s32 5, %v291_v0 }
  0x47   : > { %v224_v30 = vrot.slane %v223_v26, 1  ;;  %v241_v31 = vadd.f32 %v240_v27, %v239_v22  ;;  %v218_v32 = vadd.f32 %v217_v28, %v216_v25  ;;  %v235_v33 = vrot.slane %v234_v29, 1 }
  0x48   : > { %v342_v9 = vsub.s32 2, %v291_v0  ;;  %v346_v10 = vsub.s32 6, %v291_v0  ;;  %v368_v11 = vsub.s32 3, %v291_v0  ;;  %v372_v12 = vsub.s32 7, %v291_v0 }
  0x49   : > { %v225_v34 = vadd.f32 %v224_v30, %v223_v26  ;;  %v242_v35 = vrot.slane %v241_v31, 1  ;;  %v236_v36 = vadd.f32 %v235_v33, %v234_v29  ;;  %v244_v37 = vmul.f32 0.25, %v218_v32 }
  0x4b   : > { %v243_v38 = vadd.f32 %v242_v35, %v241_v31  ;;  %v245_v39 = vmul.f32 0.25, %v225_v34  ;;  %v246_v40 = vmul.f32 0.25, %v236_v36  ;;  %v248_v41 = vmul.f32 %v244_v37, %v244_v37 }
  0x4d   : > { %v247_v42 = vmul.f32 0.25, %v243_v38  ;;  %v249_v43 = vmul.f32 %v245_v39, %v245_v39  ;;  %v250_v44 = vsub.f32 %v246_v40, %v248_v41  ;;  %v274_v62 = vcombine.low %v244_v37, %v245_v39 }
  0x4f   : > { %v251_v45 = vsub.f32 %v247_v42, %v249_v43  ;;  %v252_v46 = vmax.f32 %v250_v44, 0.0  ;;  %v276_v1 = vsub.f32 %v866_v6, %v274_v62 }
  0x51   : > { %v253_v47 = vmax.f32 %v251_v45, 0.0  ;;  %591 = vrsqrt.f32 %v252_v46  ;;  %vm256_vm1 = vcmp.eq.f32.partialorder %v252_v46, inf  ;;  %v259_v52 = vand.u32 2147483648, %v252_v46 }
  0x52   : > { %vm258_vm3 = vcmp.eq.f32.partialorder %v252_v46, 0.0 }
  0x53   : > { %593 = vrsqrt.f32 %v253_v47  ;;  %vm263_vm2 = vcmp.eq.f32.partialorder %v253_v47, inf  ;;  %v266_v54 = vand.u32 2147483648, %v253_v47  ;;  %vm265_vm4 = vcmp.eq.f32.partialorder %v253_v47, 0.0 }
  0x5b   : > { %v592_v48 = vpop.eup %591 }
  0x5c   : > { %v255_v50 = vmul.f32 %v592_v48, %v252_v46 }
  0x5d   : > { %v594_v49 = vpop.eup %593 }
  0x5e   : > { %v262_v51 = vmul.f32 %v594_v49, %v253_v47  ;;  %v257_v53 = vsel %vm256_vm1, %v252_v46, %v255_v50 }
  0x5f   : > { %v260_v56 = vsel %vm258_vm3, %v259_v52, %v257_v53 }
  0x60   : > { %v264_v55 = vsel %vm263_vm2, %v253_v47, %v262_v51  ;;  %v268_v58 = vadd.f32 1e-05, %v260_v56 }
  0x61   : > { %v267_v57 = vsel %vm265_vm4, %v266_v54, %v264_v55 }
  0x62   : > { %v269_v59 = vadd.f32 1e-05, %v267_v57  ;;  %595 = vrcp.f32 %v268_v58 }
  0x64   : > { %597 = vrcp.f32 %v269_v59 }
  0x6c   : > { %v596_v61 = vpop.eup %595 }
  0x6e   : > { %v598_v63 = vpop.eup %597 }
  0x6f   : > { %v279_v2 = vcombine.low %v596_v61, %v598_v63 }
  0x71   : > { %v281_v5 = vmul.f32 %v279_v2, %v276_v1 }
  0x73   : > { %v293_v13 = vrot.slane %v281_v5, %v292_v3  ;;  %v297_v14 = vrot.slane %v281_v5, %v296_v4  ;;  %v317_v15 = vrot.slane %v281_v5, %v316_v7  ;;  %v321_v16 = vrot.slane %v281_v5, %v320_v8 }
  0x74   : > { %v343_v17 = vrot.slane %v281_v5, %v342_v9  ;;  %v347_v18 = vrot.slane %v281_v5, %v346_v10  ;;  %v369_v21 = vrot.slane %v281_v5, %v368_v11  ;;  %v373_v6 = vrot.slane %v281_v5, %v372_v12 }
  0x75   : > { %v303_v22 = vrot.slane %v293_v13, %v292_v3  ;;  %v307_v23 = vrot.slane %v297_v14, %v292_v3  ;;  %v327_v24 = vrot.slane %v317_v15, %v316_v7  ;;  %v331_v25 = vrot.slane %v321_v16, %v316_v7 }
  0x76   : > { %v353_v26 = vrot.slane %v343_v17, %v342_v9  ;;  %v357_v27 = vrot.slane %v347_v18, %v342_v9  ;;  %v379_v28 = vrot.slane %v369_v21, %v368_v11  ;;  %v383_v29 = vrot.slane %v373_v6, %v368_v11 }
  0xba   : > { %v287_v19 = vpop.permute.xlu0 %286  ;;  %v338_v20 = vpop.permute.xlu1 %337 }
  0xbb   : > { %v308_v32 = vmul.f32 %v303_v22, %v287_v19  ;;  %v309_v33 = vmul.f32 %v307_v23, %v287_v19  ;;  %v358_v36 = vmul.f32 %v353_v26, %v338_v20  ;;  %v359_v37 = vmul.f32 %v357_v27, %v338_v20 }
  0xbf   : > { %v312_v30 = vpop.permute.xlu0 %311  ;;  %v364_v31 = vpop.permute.xlu1 %363 }
  0xc0   : > { %v332_v34 = vmul.f32 %v327_v24, %v312_v30  ;;  %v333_v35 = vmul.f32 %v331_v25, %v312_v30  ;;  %v384_v40 = vmul.f32 %v379_v28, %v364_v31  ;;  %v385_v41 = vmul.f32 %v383_v29, %v364_v31 }
  0xc2   : > { %v334_v38 = vadd.f32 %v332_v34, %v308_v32  ;;  %v335_v39 = vadd.f32 %v333_v35, %v309_v33 }
  0xc4   : > { %v360_v42 = vadd.f32 %v358_v36, %v334_v38  ;;  %v361_v43 = vadd.f32 %v359_v37, %v335_v39  ;;  %v391_v44 = vpop.permute.xlu1 %390 }
  0xc6   : > { %v386_v45 = vadd.f32 %v384_v40, %v360_v42  ;;  %v387_v46 = vadd.f32 %v385_v41, %v361_v43 }
  0xc8   : > { %v393_v47 = vadd.f32 %v391_v44, %v386_v45  ;;  %v394_v48 = vadd.f32 %v391_v44, %v387_v46 }
  0xca   : > { %v397_v49 = vcombine.low %v393_v47, %v394_v48 }
  0xcc   : > { %399 = vst [vmem:[%s204_s19] sm:$0xff] %v397_v49 }
  0xcd   : > { %642 = shalt.err (!%p639_p6)
}
  0xce   : > { %s643_s5 = scalar_lea.hbm %s880_s28, 128  ;;  %s647_s6 = scalar_lea.hbm %s932_s3, 256 }
  0xcf   : > { %p644_p4 = scmp.ne.s32.totalorder %s880_s28, %s643_s5  ;;  %p648_p1 = scmp.lt.u32.totalorder %s880_s28, %s932_s3 }
  0xd0   : > { %p649_p2 = scmp.lt.u32.totalorder %s647_s6, %s643_s5  ;;  %p651_p8 = scmp.lt.u32.totalorder %s643_s5, %s880_s28 }
  0xd1   : > { %p645_p10 = pnand %p644_p4, %p941_p9 }
  0xd2   : > { %p650_p5 = por %p649_p2, %p648_p1 }
  0xd3   : > { %p646_p12 = pneg %p645_p10 }
  0xd4   : > { %p652_p11 = por %p651_p8, %p650_p5 }
  0xd6   : > { %p653_p0 = pnand %p652_p11, %p646_p12 }
  0xd8   : > { %656 = shalt.err (!%p653_p0)
}
  0xd9   : > { %520 = dma.vmem_to_hbm [thread:$0]  (%p941_p9), %s882_s21, 128, %s880_s28, %s401_s29  }
  0xda PF: > { %s429_s18 = sand.u32 1, %s691_s12   ;;  %p942_p7 = scmp.ne.s32.totalorder %s937_s27, 0 }
  0xdb   : > { %p943_p13 = scmp.ge.s32.totalorder %s711_s17, 2  ;;  %s430_s24 = scalar_lea.sflag [#allocation4], %s429_s18 }
  0xdd   : > { %p527_p3 = pnand %p943_p13, %p942_p7 }
  0xdf   : > { %686 = dma.done.wait (!%p527_p3), %s430_s24, 128  }
  0xe0   : > { %688 = vsyncadd (!%p527_p3), %s430_s24, 4294967168  ;;  %s19_s17 = sadd.s32 1, %s711_s17   ;;  %s944_s12 = smov %s695_s13 }
  0xe1   : > { %p16_p6 = scmp.ge.s32.totalorder %s19_s17, 4   ;;  %s945_s13 = smov %s699_s14 }
  0xe2   : > { %s946_s14 = smov %s795_s26  ;;  %s947_s15 = smov %s707_s16 }
  0xe3   : > { %s948_s16 = smov %s950_s20  ;;  %18 = sbr.rel (!%p16_p6) target bundleno = 6 (0x6), region = 77 }
  0xea   :  { %435 = vsyncpa [#allocation3], 1 }
  0xeb   :  { %437 = vsyncpa [#allocation3 + $0x1], 1 }
  0xec   :  { %438 = vsyncpa [#allocation4], 1 }
  0xed   :  { %440 = vsyncpa [#allocation4 + $0x1], 1 }

</bundles_post_ra>
